<compile_context>
chip_gen: v6e
topology: v6e:2x2x1
jax: 0.10.0
libtpu: 0.0.40
codegen_flags: <defaults>
</compile_context>

<pallas_src>
import functools

import jax
import jax.numpy as jnp
from jax import lax
from jax.experimental import pallas as pl
from jax.experimental.pallas import tpu as pltpu


def _dsc_kernel(x_ref, a_ref, bias_ref, o_ref, *, H, K, pad, use_bf16_mxu):
    """One batch-block per grid step, merged-lane layout, MXU formulation.

    x_ref   : (BN, H, W*Cin)      UNPADDED input, NHWC with (W, C) merged on lanes
    a_ref   : (K, W*Cin, W*Cout)  per-kh composed (kw-shift + dw-tap + 1x1) matrices
    bias_ref: (1, W*Cout)         fused bias (b_pw + Wpw @ b_dw) tiled across W
    o_ref   : (BN, H, W*Cout)     output, lane-dense last dim
    """
    BN = x_ref.shape[0]
    WCin = x_ref.shape[2]
    WCout = o_ref.shape[2]
    M = BN * H

    # Single load of the whole block; (BN, H, WCin) -> (M, WCin) merge is free
    # (H is a multiple of the 8-sublane tile for the shapes used here).
    xb = x_ref[...].reshape(M, WCin).astype(jnp.float32)

    # Row index within each image, used to mask the vertical zero-padding halo
    # (and the cross-image wrap of the sublane roll below).
    h_idx = lax.broadcasted_iota(jnp.int32, (BN, H, WCin), 1).reshape(M, WCin)

    mm_dtype = jnp.bfloat16 if use_bf16_mxu else jnp.float32

    acc = None
    for kh in range(K):
        s = kh - pad  # output row h reads input row h + s
        if s == 0:
            part = xb
        else:
            # XLU sublane roll brings row h+s of the SAME image into row h; rows
            # that would read the vertical halo (or wrap into the neighbouring
            # image) are exactly the masked ones.
            rolled = pltpu.roll(xb, shift=(-s) % M, axis=0)
            if s < 0:
                part = jnp.where(h_idx >= -s, rolled, 0.0)
            else:
                part = jnp.where(h_idx <= H - 1 - s, rolled, 0.0)
        # Depthwise kw taps + horizontal halo + pointwise 1x1: ONE MXU matmul.
        y = jnp.dot(part.astype(mm_dtype), a_ref[kh].astype(mm_dtype),
                    preferred_element_type=jnp.float32)            # (M, W*Cout)
        acc = y if acc is None else acc + y

    out = acc + bias_ref[...].astype(jnp.float32)
    o_ref[...] = out.reshape(BN, H, WCout).astype(o_ref.dtype)


@functools.partial(jax.jit, static_argnames=("use_bf16_mxu",))
def dsc_forward(x_nchw, w_dw, b_dw, w_pw, b_pw, *, use_bf16_mxu=False):
    """x_nchw: (N, Cin, H, W); weights in PyTorch layouts:
       w_dw (Cin, 1, K, K), b_dw (Cin,), w_pw (Cout, Cin, 1, 1), b_pw (Cout,)."""
    N, Cin, H, W = x_nchw.shape
    K = w_dw.shape[-1]
    pad = (K - 1) // 2
    Cout = w_pw.shape[0]
    f32 = jnp.float32

    # ---- activations: NCHW -> NHWC, merge (W, C) onto the lane axis (free reshape).
    # No spatial jnp.pad: halos are handled inside the kernel / inside A_kh.
    # TODO(synk): keep activations NHWC across adjacent layers to drop the two
    # transposes (extra HBM passes around a bandwidth-bound op).
    x = jnp.transpose(x_nchw, (0, 2, 3, 1))              # (N, H, W, Cin)
    xm = x.reshape(N, H, W * Cin)

    # ---- weight preprocessing (tiny, traced once per compile) -------------------
    dw = w_dw[:, 0, :, :].astype(f32)                    # (Cin, K, K)
    pw = w_pw[:, :, 0, 0].astype(f32)                    # (Cout, Cin)

    # Per-kh composed matrices A[kh] of shape (W*Cin, W*Cout):
    #   A[kh][w_in*Cin+ci, w_out*Cout+co] = dw[ci, kh, w_in - w_out + pad] * pw[co, ci]
    # and zero where the kw index falls outside [0, K) -- which is exactly the
    # horizontal zero-padding of the convolution.
    wi = jnp.arange(W)
    kw_idx = wi[:, None] - wi[None, :] + pad             # (W_in, W_out)
    kw_ok = (kw_idx >= 0) & (kw_idx < K)
    kw_cl = jnp.clip(kw_idx, 0, K - 1)

    def a_for_kh(kh):
        tap = dw[:, kh, :][:, kw_cl]                     # (Cin, W_in, W_out)
        tap = jnp.where(kw_ok[None], tap, 0.0)
        a4 = jnp.einsum("ciw,oc->icwo", tap, pw)         # (W_in, Cin, W_out, Cout)
        return a4.reshape(W * Cin, W * Cout)

    a_all = jnp.stack([a_for_kh(kh) for kh in range(K)], axis=0)   # (K, W*Cin, W*Cout)

    # Fold the depthwise bias into the pointwise bias (exact) and tile across W.
    b_fused = b_pw.astype(f32) + pw @ b_dw.astype(f32)             # (Cout,)
    bias = jnp.tile(b_fused, W).reshape(1, W * Cout)               # (1, W*Cout)

    # ---- batch-block sizing with a real VMEM budget ------------------------------
    itemsize = jnp.dtype(x_nchw.dtype).itemsize
    img_bytes = H * W * (Cin + Cout) * itemsize          # one image: input + output block
    # ~6 MiB for the double-buffered in+out blocks (-> ~1 MiB input block, BN~256
    # here) leaves ample headroom inside the 32 MiB scoped limit for the f32
    # intermediates Mosaic materializes in VMEM.
    BN = max(1, min(N, (6 << 20) // max(2 * img_bytes, 1)))
    # Keep >= min(N, 8) grid steps so the "parallel" batch axis pipelines and can be
    # split across the two v7x TensorCores.
    BN = max(1, min(BN, pl.cdiv(N, min(N, 8))))
    n_steps = pl.cdiv(N, BN)
    N_pad = n_steps * BN
    if N_pad != N:                                       # pad N up instead of BN -> 1
        xm = jnp.pad(xm, ((0, N_pad - N), (0, 0), (0, 0)))

    kernel = functools.partial(_dsc_kernel, H=H, K=K, pad=pad,
                               use_bf16_mxu=use_bf16_mxu)

    out_merged = pl.pallas_call(
        kernel,
        out_shape=jax.ShapeDtypeStruct((N_pad, H, W * Cout), x_nchw.dtype),
        grid=(n_steps,),
        in_specs=[
            pl.BlockSpec((BN, H, W * Cin), lambda b: (b, 0, 0)),
            pl.BlockSpec((K, W * Cin, W * Cout), lambda b: (0, 0, 0)),
            pl.BlockSpec((1, W * Cout), lambda b: (0, 0)),
        ],
        out_specs=pl.BlockSpec((BN, H, W * Cout), lambda b: (b, 0, 0)),
        compiler_params=pltpu.CompilerParams(
            dimension_semantics=("parallel",),
            vmem_limit_bytes=32 * 1024 * 1024,
        ),
    )(xm, a_all, bias)

    out_nhwc = out_merged[:N].reshape(N, H, W, Cout)     # free un-merge + drop batch pad
    return jnp.transpose(out_nhwc, (0, 3, 1, 2))         # back to NCHW


def _reference_dsc(x, w_dw, b_dw, w_pw, b_pw):
    """Pure-JAX reference with identical semantics to the PyTorch module."""
    nin = x.shape[1]
    dn = ("NCHW", "OIHW", "NCHW")
    y = lax.conv_general_dilated(x, w_dw, window_strides=(1, 1),
                                 padding=((1, 1), (1, 1)),
                                 feature_group_count=nin,
                                 dimension_numbers=dn,
                                 precision=lax.Precision.HIGHEST)
    y = y + b_dw[None, :, None, None]
    z = lax.conv_general_dilated(y, w_pw, window_strides=(1, 1),
                                 padding=((0, 0), (0, 0)),
                                 dimension_numbers=dn,
                                 precision=lax.Precision.HIGHEST)
    return z + b_pw[None, :, None, None]


if __name__ == "__main__":
    N, Cin, Cout, H, W, K = 2, 4, 8, 16, 16, 3

    key = jax.random.PRNGKey(0)
    k_x, k_wd, k_bd, k_wp, k_bp = jax.random.split(key, 5)

    x = jax.random.normal(k_x, (N, Cin, H, W), dtype=jnp.float32)
    # Deterministic synthetic parameters (PyTorch __init__ shapes).
    w_dw = jax.random.normal(k_wd, (Cin, 1, K, K), dtype=jnp.float32) * 0.2
    b_dw = jax.random.normal(k_bd, (Cin,), dtype=jnp.float32) * 0.1
    w_pw = jax.random.normal(k_wp, (Cout, Cin, 1, 1), dtype=jnp.float32) * 0.2
    b_pw = jax.random.normal(k_bp, (Cout,), dtype=jnp.float32) * 0.1

    ref = _reference_dsc(x, w_dw, b_dw, w_pw, b_pw)

    # f32 MXU path (default): tight check vs the f32 reference.
    out = jax.block_until_ready(dsc_forward(x, w_dw, b_dw, w_pw, b_pw))
    assert out.shape == (N, Cout, H, W)
    assert jnp.allclose(out, ref, atol=1e-3, rtol=1e-3), "Pallas DSC (f32) mismatch"

    # bf16-operand MXU path (v6e/v7x lever), f32 accumulation: looser tolerance.
    out_bf16 = jax.block_until_ready(
        dsc_forward(x, w_dw, b_dw, w_pw, b_pw, use_bf16_mxu=True))
    assert jnp.allclose(out_bf16, ref, atol=5e-2, rtol=5e-2), "Pallas DSC (bf16) mismatch"

    print("KERNEL_OK")
</pallas_src>

<mosaic_0001>
module attributes {stable_mosaic.version = 11 : i64} {
  func.func @_dsc_kernel(%arg0: i32, %arg1: memref<1x16x64xf32, #tpu.memory_space<vmem>>, %arg2: memref<3x64x128xf32, #tpu.memory_space<vmem>>, %arg3: memref<1x128xf32, #tpu.memory_space<vmem>>, %arg4: memref<1x16x128xf32, #tpu.memory_space<vmem>>) attributes {dimension_semantics = [#tpu.dimension_semantics<parallel>], iteration_bounds = array<i64: 2>, scalar_prefetch = 0 : i64, scratch_operands = 0 : i64, tpu.core_type = #tpu.core_type<tc>, window_params = [{transform_indices = @transform_0, window_bounds = array<i64: 1, 16, 64>}, {pipeline_mode = #tpu.pipeline_mode<synchronous>, transform_indices = @transform_1, window_bounds = array<i64: 3, 64, 128>}, {pipeline_mode = #tpu.pipeline_mode<synchronous>, transform_indices = @transform_2, window_bounds = array<i64: 1, 128>}, {transform_indices = @transform_3, window_bounds = array<i64: 1, 16, 128>}]} {
    %c0 = arith.constant 0 : index
    %c0_0 = arith.constant 0 : index
    %c0_1 = arith.constant 0 : index
    %0 = vector.load %arg1[%c0, %c0_0, %c0_1] : memref<1x16x64xf32, #tpu.memory_space<vmem>>, vector<1x16x64xf32>
    %1 = vector.shape_cast %0 : vector<1x16x64xf32> to vector<16x64xf32>
    %2 = tpu.iota {dimensions = array<i32: 1>} : vector<1x16x64xi32>
    %3 = vector.shape_cast %2 : vector<1x16x64xi32> to vector<16x64xi32>
    %c1_i32 = arith.constant 1 : i32
    %4 = tpu.dynamic_rotate %1 by %c1_i32 dim 0 : vector<16x64xf32>, i32 -> vector<16x64xf32>
    %c1_i32_2 = arith.constant 1 : i32
    %5 = vector.broadcast %c1_i32_2 : i32 to vector<16x64xi32>
    %6 = arith.cmpi sge, %3, %5 : vector<16x64xi32>
    %cst = arith.constant 0.000000e+00 : f32
    %7 = vector.broadcast %cst : f32 to vector<16x64xf32>
    %8 = arith.select %6, %4, %7 : vector<16x64xi1>, vector<16x64xf32>
    %c0_3 = arith.constant 0 : index
    %c0_4 = arith.constant 0 : index
    %c0_5 = arith.constant 0 : index
    %9 = vector.load %arg2[%c0_3, %c0_4, %c0_5] : memref<3x64x128xf32, #tpu.memory_space<vmem>>, vector<1x64x128xf32>
    %10 = vector.shape_cast %9 : vector<1x64x128xf32> to vector<64x128xf32>
    %cst_6 = arith.constant dense<0.000000e+00> : vector<16x128xf32>
    %11 = tpu.matmul %8, %10, %cst_6 {dimension_numbers = #tpu.dot_dimension_numbers<[1], [0], [0], [1], [0, 0, 1, 1], [], []>} : vector<16x64xf32>, vector<64x128xf32>, vector<16x128xf32> -> vector<16x128xf32>
    %c1 = arith.constant 1 : index
    %c0_7 = arith.constant 0 : index
    %c0_8 = arith.constant 0 : index
    %12 = vector.load %arg2[%c1, %c0_7, %c0_8] : memref<3x64x128xf32, #tpu.memory_space<vmem>>, vector<1x64x128xf32>
    %13 = vector.shape_cast %12 : vector<1x64x128xf32> to vector<64x128xf32>
    %cst_9 = arith.constant dense<0.000000e+00> : vector<16x128xf32>
    %14 = tpu.matmul %1, %13, %cst_9 {dimension_numbers = #tpu.dot_dimension_numbers<[1], [0], [0], [1], [0, 0, 1, 1], [], []>} : vector<16x64xf32>, vector<64x128xf32>, vector<16x128xf32> -> vector<16x128xf32>
    %15 = arith.addf %11, %14 : vector<16x128xf32>
    %c15_i32 = arith.constant 15 : i32
    %16 = tpu.dynamic_rotate %1 by %c15_i32 dim 0 : vector<16x64xf32>, i32 -> vector<16x64xf32>
    %c14_i32 = arith.constant 14 : i32
    %17 = vector.broadcast %c14_i32 : i32 to vector<16x64xi32>
    %18 = arith.cmpi sle, %3, %17 : vector<16x64xi32>
    %cst_10 = arith.constant 0.000000e+00 : f32
    %19 = vector.broadcast %cst_10 : f32 to vector<16x64xf32>
    %20 = arith.select %18, %16, %19 : vector<16x64xi1>, vector<16x64xf32>
    %c2 = arith.constant 2 : index
    %c0_11 = arith.constant 0 : index
    %c0_12 = arith.constant 0 : index
    %21 = vector.load %arg2[%c2, %c0_11, %c0_12] : memref<3x64x128xf32, #tpu.memory_space<vmem>>, vector<1x64x128xf32>
    %22 = vector.shape_cast %21 : vector<1x64x128xf32> to vector<64x128xf32>
    %cst_13 = arith.constant dense<0.000000e+00> : vector<16x128xf32>
    %23 = tpu.matmul %20, %22, %cst_13 {dimension_numbers = #tpu.dot_dimension_numbers<[1], [0], [0], [1], [0, 0, 1, 1], [], []>} : vector<16x64xf32>, vector<64x128xf32>, vector<16x128xf32> -> vector<16x128xf32>
    %24 = arith.addf %15, %23 : vector<16x128xf32>
    %c0_14 = arith.constant 0 : index
    %c0_15 = arith.constant 0 : index
    %25 = vector.load %arg3[%c0_14, %c0_15] : memref<1x128xf32, #tpu.memory_space<vmem>>, vector<1x128xf32>
    %26 = vector.broadcast %25 : vector<1x128xf32> to vector<16x128xf32>
    %27 = arith.addf %24, %26 : vector<16x128xf32>
    %28 = vector.shape_cast %27 : vector<16x128xf32> to vector<1x16x128xf32>
    %c0_16 = arith.constant 0 : index
    %c0_17 = arith.constant 0 : index
    %c0_18 = arith.constant 0 : index
    %29 = vector.load %arg4[%c0_16, %c0_17, %c0_18] : memref<1x16x128xf32, #tpu.memory_space<vmem>>, vector<1x16x128xf32>
    tpu.vector_store %arg4[%c0_16, %c0_17, %c0_18], %28 {strides = array<i32>} : memref<1x16x128xf32, #tpu.memory_space<vmem>>, vector<1x16x128xf32>,
    return
  }
  func.func @transform_0(%arg0: i32) -> (i32, i32, i32) {
    %c0_i32 = arith.constant 0 : i32
    %c0_i32_0 = arith.constant 0 : i32
    %c0_i32_1 = arith.constant 0 : i32
    return %arg0, %c0_i32, %c0_i32_0 : i32, i32, i32
  }
  func.func @transform_1(%arg0: i32) -> (i32, i32, i32) {
    %c0_i32 = arith.constant 0 : i32
    %c0_i32_0 = arith.constant 0 : i32
    %c0_i32_1 = arith.constant 0 : i32
    %c0_i32_2 = arith.constant 0 : i32
    return %c0_i32, %c0_i32_0, %c0_i32_1 : i32, i32, i32
  }
  func.func @transform_2(%arg0: i32) -> (i32, i32) {
    %c0_i32 = arith.constant 0 : i32
    %c0_i32_0 = arith.constant 0 : i32
    %c0_i32_1 = arith.constant 0 : i32
    return %c0_i32, %c0_i32_0 : i32, i32
  }
  func.func @transform_3(%arg0: i32) -> (i32, i32, i32) {
    %c0_i32 = arith.constant 0 : i32
    %c0_i32_0 = arith.constant 0 : i32
    %c0_i32_1 = arith.constant 0 : i32
    return %arg0, %c0_i32, %c0_i32_0 : i32, i32, i32
  }
}

</mosaic_0001>

<bundles_post_ra>
// kernel: tile.8
= control target key start
LH: loop header
LB: loop body
LE: loop exit
PB: predicated region body
PF: predicated region fallthrough
CT: control target
= control target key end

     0   :  { %s28_s0 = inlined_call_operand.vmem [shape: f32[8], index: 0, kind: input, shape index: {}]   ;;  %s29_s1 = inlined_call_operand.vmem [shape: f32[16,8], index: 1, kind: output, shape index: {}]  }
   0x1   :  { %v4_v0 = vld [vmem:[%s28_s0] ss:$0 sm:$0xff] }
   0x2   :  { %5 = vst [vmem:[%s29_s1] sm:$0xff] %v4_v0  ;;  %8 = vst [vmem:[%s29_s1 + $0x8] sm:$0xff] %v4_v0 }

// kernel: tile.9
= control target key start
LH: loop header
LB: loop body
LE: loop exit
PB: predicated region body
PF: predicated region fallthrough
CT: control target
= control target key end

     0   :  { %s133_s10 = smov 120   ;;  %s134_s11 = smov 104   ;;  %vm3_vm0 = vcmask 64512   ;;  %vm9_vm1 = vcmask 1048512   ;;  %vm15_vm2 = vcmask 982912   ;;  %vm21_vm3 = vcmask 917312   ;;  %s209_s0 = inlined_call_operand.vmem [shape: f32[16,8], index: 0, kind: input, shape index: {}]   ;;  %s210_s1 = inlined_call_operand.vmem [shape: f32[1,128], index: 1, kind: output, shape index: {}]  }
   0x1   :  { %v103_v0 = vld [vmem:[%s209_s0 + $0xf] sm:$0x1]   ;;  %v105_v1 = vld [vmem:[%s209_s0 + $0xd] sm:$0x1]   ;;  %v104_v2 = vld [vmem:[%s209_s0 + $0xe] sm:$0x1]  }
   0x2   :  { %7 = vrot.lane.b32.xlu0 %v103_v0, %s133_s10  ;;  %19 = vrot.lane.b32.xlu1 %v105_v1, %s134_s11  ;;  %v106_v3 = vld [vmem:[%s209_s0 + $0xc] sm:$0x1]   ;;  %s135_s16 = smov 112   ;;  %s136_s17 = smov 96   ;;  %v107_v4 = vld [vmem:[%s209_s0 + $0xb] sm:$0x1]  }
   0x3   :  { %v108_v5 = vld [vmem:[%s209_s0 + $0xa] sm:$0x1]   ;;  %v2_v6 = vld [vmem:[%s209_s0] sm:$0x1]   ;;  %s137_s24 = smov 88   ;;  %s138_s25 = smov 80  }
   0x4   :  { %4 = vst.msk [vmem:[#allocation0] sm:$0x1] %vm3_vm0, %v2_v6   ;;  %v109_v7 = vld [vmem:[%s209_s0 + $0x9] sm:$0x1]   ;;  %v110_v8 = vld [vmem:[%s209_s0 + $0x8] sm:$0x1]  }
   0x5   :  { %s139_s30 = smov 72   ;;  %s140_s2 = smov 64   ;;  %v111_v9 = vld [vmem:[%s209_s0 + $0x7] sm:$0x1]   ;;  %v112_v10 = vld [vmem:[%s209_s0 + $0x6] sm:$0x1]  }
   0x6   :  { %13 = vrot.lane.b32.xlu0 %v104_v2, %s135_s16  ;;  %25 = vrot.lane.b32.xlu1 %v106_v3, %s136_s17  ;;  %s141_s7 = smov 56   ;;  %s142_s8 = smov 48   ;;  %v113_v11 = vld [vmem:[%s209_s0 + $0x5] sm:$0x1]   ;;  %v114_v12 = vld [vmem:[%s209_s0 + $0x4] sm:$0x1]  }
   0x7   :  { %s143_s13 = smov 40   ;;  %s144_s14 = smov 32   ;;  %v115_v13 = vld [vmem:[%s209_s0 + $0x3] sm:$0x1]   ;;  %v116_v14 = vld [vmem:[%s209_s0 + $0x2] sm:$0x1]  }
   0x8   :  { %s145_s19 = smov 24   ;;  %s146_s20 = smov 16   ;;  %v117_v15 = vld [vmem:[%s209_s0 + $0x1] sm:$0x1]   ;;  %vm27_vm4 = vcmask 851712   ;;  %vm33_vm5 = vcmask 786112  }
   0x9   :  { %s147_s0 = smov 8   ;;  %vm39_vm6 = vcmask 720512   ;;  %vm45_vm7 = vcmask 654912   ;;  %vm51_vm8 = vcmask 589312   ;;  %vm57_vm9 = vcmask 523712  }
   0xa   :  { %31 = vrot.lane.b32.xlu0 %v107_v4, %s137_s24  ;;  %37 = vrot.lane.b32.xlu1 %v108_v5, %s138_s25  ;;  %vm63_vm10 = vcmask 458112   ;;  %vm69_vm11 = vcmask 392512   ;;  %vm75_vm12 = vcmask 326912   ;;  %vm81_vm13 = vcmask 261312  }
   0xb   :  { %vm87_vm14 = vcmask 195712   ;;  %vm93_vm15 = vcmask 130112  }
   0xe   :  { %43 = vrot.lane.b32.xlu0 %v109_v7, %s139_s30  ;;  %49 = vrot.lane.b32.xlu1 %v110_v8, %s140_s2 }
  0x12   :  { %55 = vrot.lane.b32.xlu0 %v111_v9, %s141_s7  ;;  %61 = vrot.lane.b32.xlu1 %v112_v10, %s142_s8 }
  0x16   :  { %67 = vrot.lane.b32.xlu0 %v113_v11, %s143_s13  ;;  %73 = vrot.lane.b32.xlu1 %v114_v12, %s144_s14 }
  0x1a   :  { %79 = vrot.lane.b32.xlu0 %v115_v13, %s145_s19  ;;  %85 = vrot.lane.b32.xlu1 %v116_v14, %s146_s20 }
  0x1e   :  { %91 = vrot.lane.b32.xlu0 %v117_v15, %s147_s0 }
  0x74   :  { %v8_v16 = vpop.permute.xlu0 %7   ;;  %v20_v17 = vpop.permute.xlu1 %19  }
  0x75   :  { %10 = vst.msk [vmem:[#allocation0] sm:$0x1] %vm9_vm1, %v8_v16  }
  0x78   :  { %v14_v18 = vpop.permute.xlu0 %13   ;;  %v26_v19 = vpop.permute.xlu1 %25  }
  0x79   :  { %16 = vst.msk [vmem:[#allocation0] sm:$0x1] %vm15_vm2, %v14_v18  }
  0x7a   :  { %22 = vst.msk [vmem:[#allocation0] sm:$0x1] %vm21_vm3, %v20_v17  }
  0x7b   :  { %28 = vst.msk [vmem:[#allocation0] sm:$0x1] %vm27_vm4, %v26_v19  }
  0x7c   :  { %v32_v20 = vpop.permute.xlu0 %31   ;;  %v38_v21 = vpop.permute.xlu1 %37  }
  0x7d   :  { %34 = vst.msk [vmem:[#allocation0] sm:$0x1] %vm33_vm5, %v32_v20  }
  0x7e   :  { %40 = vst.msk [vmem:[#allocation0] sm:$0x1] %vm39_vm6, %v38_v21  }
  0x80   :  { %v44_v22 = vpop.permute.xlu0 %43   ;;  %v50_v23 = vpop.permute.xlu1 %49  }
  0x81   :  { %46 = vst.msk [vmem:[#allocation0] sm:$0x1] %vm45_vm7, %v44_v22  }
  0x82   :  { %52 = vst.msk [vmem:[#allocation0] sm:$0x1] %vm51_vm8, %v50_v23  }
  0x84   :  { %v56_v24 = vpop.permute.xlu0 %55   ;;  %v62_v25 = vpop.permute.xlu1 %61  }
  0x85   :  { %58 = vst.msk [vmem:[#allocation0] sm:$0x1] %vm57_vm9, %v56_v24  }
  0x86   :  { %64 = vst.msk [vmem:[#allocation0] sm:$0x1] %vm63_vm10, %v62_v25  }
  0x88   :  { %v68_v26 = vpop.permute.xlu0 %67   ;;  %v74_v27 = vpop.permute.xlu1 %73  }
  0x89   :  { %70 = vst.msk [vmem:[#allocation0] sm:$0x1] %vm69_vm11, %v68_v26  }
  0x8a   :  { %76 = vst.msk [vmem:[#allocation0] sm:$0x1] %vm75_vm12, %v74_v27  }
  0x8c   :  { %v80_v28 = vpop.permute.xlu0 %79   ;;  %v86_v29 = vpop.permute.xlu1 %85  }
  0x8d   :  { %82 = vst.msk [vmem:[#allocation0] sm:$0x1] %vm81_vm13, %v80_v28  }
  0x8e   :  { %88 = vst.msk [vmem:[#allocation0] sm:$0x1] %vm87_vm14, %v86_v29  }
  0x90   :  { %v92_v30 = vpop.permute.xlu0 %91  }
  0x91   :  { %94 = vst.msk [vmem:[#allocation0] sm:$0x1] %vm93_vm15, %v92_v30  }
  0x98   :  { %v99_v31 = vld [vmem:[#allocation0] sm:$0x1] }
  0x99   :  { %102 = vst [vmem:[%s210_s1] sm:$0x1] %v99_v31 }

// kernel: dsc_forward.1
= control target key start
LH: loop header
LB: loop body
LE: loop exit
PB: predicated region body
PF: predicated region fallthrough
CT: control target
= control target key end

     0   :  { %s691_s12 = smov 0   ;;  %s820_s0 = inlined_call_operand.vmem [shape: f32[2,16,64], index: 0, kind: input, shape index: {}]   ;;  %s821_s1 = inlined_call_operand.vmem [shape: f32[3,64,128], index: 1, kind: input, shape index: {}]   ;;  %s822_s2 = inlined_call_operand.vmem [shape: f32[1,128], index: 2, kind: input, shape index: {}]   ;;  %s823_s3 = inlined_call_operand.vmem [shape: f32[2,16,128], index: 3, kind: output, shape index: {}]  }
   0x1 LB: > { %s532_s13 = sadd.s32 4294967295, %s669_s12   ;;  %p536_p0 = scmp.ge.s32.totalorder %s669_s12, 1  ;;  %s669_s12 = sphi %s691_s12, %s13_s12  }
   0x2   : > { %p137_p1 = scmp.lt.s32.totalorder %s669_s12, 3 }
   0x4   : > { %p138_p2 = pnand %p536_p0, %p137_p1 }
   0x5   : > { %p161_p3 = scmp.lt.s32.totalorder (!%p138_p2), %s532_s13, 1 }
   0x6   : > { %141 = sbr.rel (%p138_p2) target bundleno = 246 (0xf6), region = 32 }
   0xb   : > { %v548_v0 = vld [vmem:[%s821_s1 + $0x78] sm:$0xff]  ;;  %v547_v2 = vld [vmem:[%s821_s1 + $0x70] sm:$0xff]  ;;  %v173_v3 = vlaneseq  ;;  %v546_v5 = vld [vmem:[%s821_s1 + $0x68] sm:$0xff]  ;;  %s825_s13 = smov (!%p161_p3, %s532_s13), 1  ;;  %vm202_vm2 = vcmask 523264  }
   0xc   : > { %v192_v1 = vld [vmem:[%s821_s1 + $0x38] sm:$0xff]  ;;  %598 = vmatprep.subr.mxu0 %v548_v0  ;;  %v191_v4 = vld [vmem:[%s821_s1 + $0x30] sm:$0xff]  ;;  %v190_v6 = vld [vmem:[%s821_s1 + $0x28] sm:$0xff]  ;;  %s566_s30 = sshll.u32 %s825_s13, 4 }
   0xd   : > { %617 = vmatprep.subr.mxu1 %v192_v1  ;;  %599 = vmatpush3.msra.mxu0 %v548_v0  ;;  %v545_v7 = vld [vmem:[%s821_s1 + $0x60] sm:$0xff]  ;;  %v726_v9 = vshrl.u32 %v173_v3, 7  ;;  %v544_v10 = vld [vmem:[%s821_s1 + $0x58] sm:$0xff]  ;;  %s165_s8 = scalar_lea.vmem %s820_s0, %s566_s30  ;;  %v543_v16 = vld [vmem:[%s821_s1 + $0x50] sm:$0xff]  ;;  %s170_s21 = scalar_lea.vmem %s823_s3, %s566_s30 }
   0xe   : > { %618 = vmatpush3.msra.mxu1 %v192_v1  ;;  %600 = vmatprep.subr.mxu0 %v547_v2  ;;  %v189_v8 = vld [vmem:[%s821_s1 + $0x20] sm:$0xff]  ;;  %v188_v11 = vld [vmem:[%s821_s1 + $0x18] sm:$0xff]  ;;  %v741_v13 = vld [vmem:[%s165_s8 + $0x8] sm:$0xff] }
   0xf   : > { %619 = vmatprep.subr.mxu1 %v191_v4  ;;  %601 = vmatpush3.msra.mxu0 %v547_v2  ;;  %v739_v12 = vld [vmem:[%s165_s8] sm:$0xff]  ;;  %v177_v15 = vrot.slane %v741_v13, 7  ;;  %v187_v17 = vld [vmem:[%s821_s1 + $0x10] sm:$0xff]  ;;  %vm178_vm0 = vcmp.lt.s32.totalorder %v726_v9, 1  ;;  %v542_v18 = vld [vmem:[%s821_s1 + $0x48] sm:$0xff]  ;;  %vm181_vm1 = vcmp.ge.s32.totalorder %v726_v9, 1 }
  0x10   : > { %620 = vmatpush3.msra.mxu1 %v191_v4  ;;  %602 = vmatprep.subr.mxu0 %v546_v5  ;;  %v176_v14 = vrot.slane %v739_v12, 7  ;;  %v186_v19 = vld [vmem:[%s821_s1 + $0x8] sm:$0xff]  ;;  %v541_v21 = vld [vmem:[%s821_s1 + $0x40] sm:$0xff]  ;;  %v365_v23 = vrot.slane %v739_v12, 1  ;;  %v366_v24 = vrot.slane %v741_v13, 1  ;;  %vm367_vm3 = vcmp.lt.s32.totalorder %v726_v9, 7 }
  0x11   : > { %621 = vmatprep.subr.mxu1 %v190_v6  ;;  %603 = vmatpush3.msra.mxu0 %v546_v5  ;;  %v185_v22 = vld [vmem:[%s821_s1] sm:$0xff]  ;;  %v560_v27 = vld [vmem:[%s821_s1 + $0xb8] sm:$0xff]  ;;  %v559_v29 = vld [vmem:[%s821_s1 + $0xb0] sm:$0xff]  ;;  %v175_v33 = vadd.s32 8, %v726_v9 }
  0x12   : > { %622 = vmatpush3.msra.mxu1 %v190_v6  ;;  %604 = vmatprep.subr.mxu0 %v545_v7  ;;  %v180_v20 = vsel %vm178_vm0, %v177_v15, %v176_v14  ;;  %v179_v26 = vsel %vm178_vm0, %v176_v14, %v177_v15  ;;  %v368_v28 = vsel %vm367_vm3, %v365_v23, %v366_v24  ;;  %v558_v30 = vld [vmem:[%s821_s1 + $0xa8] sm:$0xff]  ;;  %v557_v31 = vld [vmem:[%s821_s1 + $0xa0] sm:$0xff]  ;;  %v556_v32 = vld [vmem:[%s821_s1 + $0x98] sm:$0xff] }
  0x13   : > { %623 = vmatprep.subr.mxu1 %v189_v8  ;;  %605 = vmatpush3.msra.mxu0 %v545_v7  ;;  %v183_v25 = vsel %vm181_vm1, %v180_v20, 0.0  ;;  %v555_v34 = vld [vmem:[%s821_s1 + $0x90] sm:$0xff]  ;;  %v554_v35 = vld [vmem:[%s821_s1 + $0x88] sm:$0xff]  ;;  %v369_v36 = vsel %vm367_vm3, %v366_v24, %v365_v23  ;;  %vm371_vm4 = vcmp.le.s32.totalorder %v175_v33, 14  ;;  %v553_v37 = vld [vmem:[%s821_s1 + $0x80] sm:$0xff] }
  0x14   : > { %624 = vmatpush3.msra.mxu1 %v189_v8  ;;  %606 = vmatprep.subr.mxu0 %v544_v10  ;;  %v373_v38 = vsel %vm371_vm4, %v369_v36, 0.0  ;;  %v563_v45 = vld [vmem:[%s822_s2] ss:$0 sm:$0xff] }
  0x15   : > { %625 = vmatprep.subr.mxu1 %v188_v11  ;;  %607 = vmatpush3.msra.mxu0 %v544_v10 }
  0x16   : > { %626 = vmatpush3.msra.mxu1 %v188_v11  ;;  %608 = vmatprep.subr.mxu0 %v543_v16 }
  0x17   : > { %627 = vmatprep.subr.mxu1 %v187_v17  ;;  %609 = vmatpush3.msra.mxu0 %v543_v16 }
  0x18   : > { %628 = vmatpush3.msra.mxu1 %v187_v17  ;;  %610 = vmatprep.subr.mxu0 %v542_v18 }
  0x19   : > { %629 = vmatprep.subr.mxu1 %v186_v19  ;;  %611 = vmatpush3.msra.mxu0 %v542_v18 }
  0x1a   : > { %630 = vmatpush3.msra.mxu1 %v186_v19  ;;  %612 = vmatprep.subr.mxu0 %v541_v21 }
  0x1b   : > { %631 = vmatprep.subr.mxu1 %v185_v22  ;;  %613 = vmatpush3.msra.mxu0 %v541_v21 }
  0x1c   : > { %614 = vmatprep.mubr.msk.f32.mxu0 %vm202_vm2, %v739_v12  ;;  %632 = vmatpush3.msra.mxu1 %v185_v22 }
  0x1d   : > { %633 = vmatprep.mubr.msk.f32.mxu1 %vm202_vm2, %v183_v25  ;;  %615 = vmatmul.mubr.msk.f32.vlgmr.msra.gmra.mxu0 %vm202_vm2, %v741_v13 }
  0x1e   : > { %634 = vmatmul.mubr.msk.f32.vlgmr.msra.gmra.mxu1 %vm202_vm2, %v179_v26  ;;  %636 = vmatprep.subr.mxu0 %v560_v27 }
  0x1f   : > { %652 = vmatprep.mubr.msk.f32.mxu0 %vm202_vm2, %v368_v28  ;;  %637 = vmatpush3.msra.mxu0 %v560_v27 }
  0x20   : > { %638 = vmatprep.subr.mxu0 %v559_v29 }
  0x21   : > { %639 = vmatpush3.msra.mxu0 %v559_v29 }
  0x22   : > { %640 = vmatprep.subr.mxu0 %v558_v30 }
  0x23   : > { %641 = vmatpush3.msra.mxu0 %v558_v30 }
  0x24   : > { %642 = vmatprep.subr.mxu0 %v557_v31 }
  0x25   : > { %643 = vmatpush3.msra.mxu0 %v557_v31 }
  0x26   : > { %644 = vmatprep.subr.mxu0 %v556_v32 }
  0x27   : > { %645 = vmatpush3.msra.mxu0 %v556_v32 }
  0x28   : > { %646 = vmatprep.subr.mxu0 %v555_v34 }
  0x29   : > { %647 = vmatpush3.msra.mxu0 %v555_v34 }
  0x2a   : > { %648 = vmatprep.subr.mxu0 %v554_v35 }
  0x2b   : > { %649 = vmatpush3.msra.mxu0 %v554_v35 }
  0x2c   : > { %650 = vmatprep.subr.mxu0 %v553_v37 }
  0x2d   : > { %651 = vmatpush3.msra.mxu0 %v553_v37 }
  0x2e   : > { %653 = vmatmul.mubr.msk.f32.vlgmr.msra.gmra.mxu0 %vm202_vm2, %v373_v38 }
  0xdd   : > { %v616_v39 = vpop.f32.mrf.mxu0 }
  0xde   : > { %v635_v40 = vpop.f32.mrf.mxu1 }
  0xdf   : > { %v275_v41 = vpop.f32.mrf.mxu0  ;;  %v362_v43 = vadd.f32 %v635_v40, %v616_v39 }
  0xe0   : > { %v356_v42 = vpop.f32.mrf.mxu1 }
  0xe1   : > { %v357_v46 = vadd.f32 %v356_v42, %v275_v41 }
  0xee   : > { %v654_v44 = vpop.f32.mrf.mxu0 }
  0xef   : > { %v465_v47 = vadd.f32 %v654_v44, %v362_v43 }
  0xf0   : > { %v455_v48 = vpop.f32.mrf.mxu0 }
  0xf1   : > { %v474_v49 = vadd.f32 %v563_v45, %v465_v47  ;;  %v464_v50 = vadd.f32 %v455_v48, %v357_v46 }
  0xf3   : > { %476 = vst [vmem:[%s170_s21 + $0x8] sm:$0xff] %v474_v49  ;;  %v473_v51 = vadd.f32 %v563_v45, %v464_v50 }
  0xf5   : > { %475 = vst [vmem:[%s170_s21] sm:$0xff] %v473_v51 }
  0xf6 PF: > { %s13_s12 = sadd.s32 1, %s669_s12  }
  0xf7   : > { %p10_p4 = scmp.ge.s32.totalorder %s13_s12, 4  }
  0xf9   :  { %12 = sbr.rel (!%p10_p4) target bundleno = 1 (0x1), region = 64 }

</bundles_post_ra>
